<compile_context>
chip_gen: v6e
topology: v6e:2x2x1
jax: 0.10.0
libtpu: 0.0.40
codegen_flags: <defaults>
</compile_context>

<pallas_src>
import jax
import jax.numpy as jnp
from jax.experimental import pallas as pl
from jax.experimental.pallas import tpu as pltpu


def _round_up(x, m):
    return ((x + m - 1) // m) * m


@jax.jit
def model_forward(x_nchw, w_conv_oihw, b_conv, w_head, b_head):
    """x_nchw: (N, C, H, W) float32 (PyTorch layout). Returns (N, num_classes)."""
    N, C, H, W = x_nchw.shape
    HW = H * W
    C_out = w_conv_oihw.shape[0]
    n_cls = w_head.shape[1]
    NCLS_PAD = _round_up(n_cls, 128)
    assert W % 8 == 0, "kh row-slices stay sublane-aligned when W % 8 == 0"

    # ---- glue (cheap, no im2col): NCHW -> NHWC, pad spatially, stack the 3
    #      kw shifts on the channel axis, flatten rows -> (N, (H+2)*W, 3C) ----
    x = jnp.transpose(x_nchw, (0, 2, 3, 1))                    # (N, H, W, C)
    xp = jnp.pad(x, ((0, 0), (1, 1), (1, 1), (0, 0)))          # (N, H+2, W+2, C)
    x3 = jnp.concatenate([xp[:, :, kw:kw + W, :] for kw in range(3)], axis=-1)
    x3 = x3.reshape(N, (H + 2) * W, 3 * C).astype(jnp.bfloat16)

    # ---- conv weight regrouped by kh: wc3[kh, kw*C + i, o] = w[o, i, kh, kw]
    wc3 = jnp.transpose(w_conv_oihw, (2, 3, 1, 0)).reshape(3, 3 * C, C_out)
    wc3 = wc3.astype(jnp.bfloat16)
    bc = b_conv.reshape(1, C_out).astype(jnp.float32)
    wh_p = jnp.pad(w_head, ((0, 0), (0, NCLS_PAD - n_cls))).astype(jnp.float32)
    bh_p = jnp.pad(b_head.reshape(1, n_cls),
                   ((0, 0), (0, NCLS_PAD - n_cls))).astype(jnp.float32)

    def kernel(x_ref, wc_ref, bc_ref, wh_ref, bh_ref, out_ref):
        # x_ref  : (1, (H+2)*W, 3C) bf16   one padded, kw-stacked image
        # wc_ref : (3, 3C, C_out)   bf16   conv taps grouped by kh
        # bc_ref : (1, C_out)       f32    conv bias
        # wh_ref : (C_out, NCLS_PAD) f32   head weight (zero-padded cols)
        # bh_ref : (1, NCLS_PAD)    f32    head bias (zero-padded)
        # out_ref: (1, 1, NCLS_PAD) f32    lane-dense logits slab

        # --- fused im2col conv: 3 kh-shifted sub-GEMMs, aligned row offsets,
        #     bf16 operands with f32 accumulation on the MXU ---
        conv = jnp.dot(x_ref[0, 0:HW, :], wc_ref[0],
                       preferred_element_type=jnp.float32)      # (HW, C_out)
        for kh in (1, 2):
            rows = x_ref[0, kh * W:kh * W + HW, :]               # aligned slice
            conv = conv + jnp.dot(rows, wc_ref[kh],
                                  preferred_element_type=jnp.float32)
        conv = jnp.maximum(conv + bc_ref[...], 0.0)              # bias + ReLU

        # --- global average pool: per-image ones-vector MXU matmul ---
        inv_hw = jnp.full((1, HW), 1.0 / HW, dtype=jnp.float32)
        pooled = jnp.dot(inv_hw, conv,
                         preferred_element_type=jnp.float32)     # (1, C_out)

        # --- head: linear, lane-dense padded output store ---
        logits = jnp.dot(pooled, wh_ref[...],
                         preferred_element_type=jnp.float32) + bh_ref[...]
        out_ref[0] = logits                                      # (1, NCLS_PAD)

    out = pl.pallas_call(
        kernel,
        out_shape=jax.ShapeDtypeStruct((N, 1, NCLS_PAD), jnp.float32),
        grid=(N,),
        in_specs=[
            pl.BlockSpec((1, (H + 2) * W, 3 * C), lambda n: (n, 0, 0)),
            pl.BlockSpec((3, 3 * C, C_out), lambda n: (0, 0, 0)),
            pl.BlockSpec((1, C_out), lambda n: (0, 0)),
            pl.BlockSpec((C_out, NCLS_PAD), lambda n: (0, 0)),
            pl.BlockSpec((1, NCLS_PAD), lambda n: (0, 0)),
        ],
        out_specs=pl.BlockSpec((1, 1, NCLS_PAD), lambda n: (n, 0, 0)),
        compiler_params=pltpu.CompilerParams(
            dimension_semantics=("parallel",)),  # batch shards across TCs (v7x)
    )(x3, wc3, bc, wh_p, bh_p)
    return out[:, 0, :n_cls]


def init_params(key, c_in, c_out, n_cls):
    """Deterministic PyTorch-shaped parameters (OIHW conv weight, etc.)."""
    k1, k2, k3, k4 = jax.random.split(key, 4)
    w_conv_oihw = 0.1 * jax.random.normal(k1, (c_out, c_in, 3, 3), jnp.float32)
    b_conv = 0.1 * jax.random.normal(k2, (c_out,), jnp.float32)
    w_head = 0.1 * jax.random.normal(k3, (c_out, n_cls), jnp.float32)
    b_head = 0.1 * jax.random.normal(k4, (n_cls,), jnp.float32)
    return w_conv_oihw, b_conv, w_head, b_head


def reference_forward(x_nchw, w_conv_oihw, b_conv, w_head, b_head):
    """Pure-JAX f32 reference (independent conv path) for validation."""
    conv = jax.lax.conv_general_dilated(
        x_nchw, w_conv_oihw, window_strides=(1, 1), padding="SAME",
        dimension_numbers=("NCHW", "OIHW", "NCHW"))
    conv = jnp.maximum(conv + b_conv.reshape(1, -1, 1, 1), 0.0)
    pooled = jnp.mean(conv, axis=(2, 3))                         # (N, C_out)
    return pooled @ w_head + b_head


if __name__ == "__main__":
    N, C_IN, H, W = 2, 4, 16, 16
    C_OUT, N_CLS = 32, 10

    key = jax.random.PRNGKey(0)
    kx, kp = jax.random.split(key)
    x = jax.random.normal(kx, (N, C_IN, H, W), jnp.float32)
    w_conv_oihw, b_conv, w_head, b_head = init_params(kp, C_IN, C_OUT, N_CLS)

    out = model_forward(x, w_conv_oihw, b_conv, w_head, b_head)
    out = jax.block_until_ready(out)

    ref = reference_forward(x, w_conv_oihw, b_conv, w_head, b_head)
    assert out.shape == (N, N_CLS)
    # bf16 conv operands with f32 accumulation -> looser tolerance than pure f32.
    assert jnp.allclose(out, ref, atol=3e-2, rtol=3e-2), (
        f"max abs diff {jnp.max(jnp.abs(out - ref))}")

    print("KERNEL_OK")
</pallas_src>

<mosaic_0001>
module attributes {stable_mosaic.version = 11 : i64} {
  func.func @kernel(%arg0: i32, %arg1: memref<1x288x12xbf16, #tpu.memory_space<vmem>>, %arg2: memref<3x12x32xbf16, #tpu.memory_space<vmem>>, %arg3: memref<1x32xf32, #tpu.memory_space<vmem>>, %arg4: memref<32x128xf32, #tpu.memory_space<vmem>>, %arg5: memref<1x128xf32, #tpu.memory_space<vmem>>, %arg6: memref<1x1x128xf32, #tpu.memory_space<vmem>>) attributes {dimension_semantics = [#tpu.dimension_semantics<parallel>], iteration_bounds = array<i64: 2>, scalar_prefetch = 0 : i64, scratch_operands = 0 : i64, tpu.core_type = #tpu.core_type<tc>, window_params = [{transform_indices = @transform_0, window_bounds = array<i64: 1, 288, 12>}, {pipeline_mode = #tpu.pipeline_mode<synchronous>, transform_indices = @transform_1, window_bounds = array<i64: 3, 12, 32>}, {pipeline_mode = #tpu.pipeline_mode<synchronous>, transform_indices = @transform_2, window_bounds = array<i64: 1, 32>}, {pipeline_mode = #tpu.pipeline_mode<synchronous>, transform_indices = @transform_3, window_bounds = array<i64: 32, 128>}, {pipeline_mode = #tpu.pipeline_mode<synchronous>, transform_indices = @transform_4, window_bounds = array<i64: 1, 128>}, {transform_indices = @transform_5, window_bounds = array<i64: 1, 1, 128>}]} {
    %c0 = arith.constant 0 : index
    %c0_0 = arith.constant 0 : index
    %c0_1 = arith.constant 0 : index
    %0 = vector.load %arg1[%c0, %c0_0, %c0_1] : memref<1x288x12xbf16, #tpu.memory_space<vmem>>, vector<1x256x12xbf16>
    %1 = vector.shape_cast %0 : vector<1x256x12xbf16> to vector<256x12xbf16>
    %c0_2 = arith.constant 0 : index
    %c0_3 = arith.constant 0 : index
    %c0_4 = arith.constant 0 : index
    %2 = vector.load %arg2[%c0_2, %c0_3, %c0_4] : memref<3x12x32xbf16, #tpu.memory_space<vmem>>, vector<1x12x32xbf16>
    %3 = vector.shape_cast %2 : vector<1x12x32xbf16> to vector<12x32xbf16>
    %cst = arith.constant dense<0.000000e+00> : vector<256x32xf32>
    %4 = tpu.matmul %1, %3, %cst {dimension_numbers = #tpu.dot_dimension_numbers<[1], [0], [0], [1], [0, 0, 1, 1], [], []>} : vector<256x12xbf16>, vector<12x32xbf16>, vector<256x32xf32> -> vector<256x32xf32>
    %c0_5 = arith.constant 0 : index
    %c16 = arith.constant 16 : index
    %c0_6 = arith.constant 0 : index
    %5 = vector.load %arg1[%c0_5, %c16, %c0_6] : memref<1x288x12xbf16, #tpu.memory_space<vmem>>, vector<1x256x12xbf16>
    %6 = vector.shape_cast %5 : vector<1x256x12xbf16> to vector<256x12xbf16>
    %c1 = arith.constant 1 : index
    %c0_7 = arith.constant 0 : index
    %c0_8 = arith.constant 0 : index
    %7 = vector.load %arg2[%c1, %c0_7, %c0_8] : memref<3x12x32xbf16, #tpu.memory_space<vmem>>, vector<1x12x32xbf16>
    %8 = vector.shape_cast %7 : vector<1x12x32xbf16> to vector<12x32xbf16>
    %cst_9 = arith.constant dense<0.000000e+00> : vector<256x32xf32>
    %9 = tpu.matmul %6, %8, %cst_9 {dimension_numbers = #tpu.dot_dimension_numbers<[1], [0], [0], [1], [0, 0, 1, 1], [], []>} : vector<256x12xbf16>, vector<12x32xbf16>, vector<256x32xf32> -> vector<256x32xf32>
    %10 = arith.addf %4, %9 : vector<256x32xf32>
    %c0_10 = arith.constant 0 : index
    %c32 = arith.constant 32 : index
    %c0_11 = arith.constant 0 : index
    %11 = vector.load %arg1[%c0_10, %c32, %c0_11] : memref<1x288x12xbf16, #tpu.memory_space<vmem>>, vector<1x256x12xbf16>
    %12 = vector.shape_cast %11 : vector<1x256x12xbf16> to vector<256x12xbf16>
    %c2 = arith.constant 2 : index
    %c0_12 = arith.constant 0 : index
    %c0_13 = arith.constant 0 : index
    %13 = vector.load %arg2[%c2, %c0_12, %c0_13] : memref<3x12x32xbf16, #tpu.memory_space<vmem>>, vector<1x12x32xbf16>
    %14 = vector.shape_cast %13 : vector<1x12x32xbf16> to vector<12x32xbf16>
    %cst_14 = arith.constant dense<0.000000e+00> : vector<256x32xf32>
    %15 = tpu.matmul %12, %14, %cst_14 {dimension_numbers = #tpu.dot_dimension_numbers<[1], [0], [0], [1], [0, 0, 1, 1], [], []>} : vector<256x12xbf16>, vector<12x32xbf16>, vector<256x32xf32> -> vector<256x32xf32>
    %16 = arith.addf %10, %15 : vector<256x32xf32>
    %c0_15 = arith.constant 0 : index
    %c0_16 = arith.constant 0 : index
    %17 = vector.load %arg3[%c0_15, %c0_16] : memref<1x32xf32, #tpu.memory_space<vmem>>, vector<1x32xf32>
    %18 = vector.broadcast %17 : vector<1x32xf32> to vector<256x32xf32>
    %19 = arith.addf %16, %18 : vector<256x32xf32>
    %cst_17 = arith.constant 0.000000e+00 : f32
    %20 = vector.broadcast %cst_17 : f32 to vector<256x32xf32>
    %21 = arith.maximumf %19, %20 : vector<256x32xf32>
    %cst_18 = arith.constant 3.906250e-03 : f32
    %22 = vector.broadcast %cst_18 : f32 to vector<1x256xf32>
    %cst_19 = arith.constant dense<0.000000e+00> : vector<1x32xf32>
    %23 = tpu.matmul %22, %21, %cst_19 {dimension_numbers = #tpu.dot_dimension_numbers<[1], [0], [0], [1], [0, 0, 1, 1], [], []>} : vector<1x256xf32>, vector<256x32xf32>, vector<1x32xf32> -> vector<1x32xf32>
    %c0_20 = arith.constant 0 : index
    %c0_21 = arith.constant 0 : index
    %24 = vector.load %arg4[%c0_20, %c0_21] : memref<32x128xf32, #tpu.memory_space<vmem>>, vector<32x128xf32>
    %cst_22 = arith.constant dense<0.000000e+00> : vector<1x128xf32>
    %25 = tpu.matmul %23, %24, %cst_22 {dimension_numbers = #tpu.dot_dimension_numbers<[1], [0], [0], [1], [0, 0, 1, 1], [], []>} : vector<1x32xf32>, vector<32x128xf32>, vector<1x128xf32> -> vector<1x128xf32>
    %c0_23 = arith.constant 0 : index
    %c0_24 = arith.constant 0 : index
    %26 = vector.load %arg5[%c0_23, %c0_24] : memref<1x128xf32, #tpu.memory_space<vmem>>, vector<1x128xf32>
    %27 = arith.addf %25, %26 : vector<1x128xf32>
    %c0_25 = arith.constant 0 : index
    %c0_26 = arith.constant 0 : index
    %c0_27 = arith.constant 0 : index
    %28 = vector.load %arg6[%c0_25, %c0_26, %c0_27] : memref<1x1x128xf32, #tpu.memory_space<vmem>>, vector<1x1x128xf32>
    %29 = vector.shape_cast %28 : vector<1x1x128xf32> to vector<1x128xf32>
    %30 = vector.shape_cast %27 : vector<1x128xf32> to vector<1x1x128xf32>
    tpu.vector_store %arg6[%c0_25, %c0_26, %c0_27], %30 {strides = array<i32>} : memref<1x1x128xf32, #tpu.memory_space<vmem>>, vector<1x1x128xf32>,
    return
  }
  func.func @transform_0(%arg0: i32) -> (i32, i32, i32) {
    %c0_i32 = arith.constant 0 : i32
    %c0_i32_0 = arith.constant 0 : i32
    %c0_i32_1 = arith.constant 0 : i32
    return %arg0, %c0_i32, %c0_i32_0 : i32, i32, i32
  }
  func.func @transform_1(%arg0: i32) -> (i32, i32, i32) {
    %c0_i32 = arith.constant 0 : i32
    %c0_i32_0 = arith.constant 0 : i32
    %c0_i32_1 = arith.constant 0 : i32
    %c0_i32_2 = arith.constant 0 : i32
    return %c0_i32, %c0_i32_0, %c0_i32_1 : i32, i32, i32
  }
  func.func @transform_2(%arg0: i32) -> (i32, i32) {
    %c0_i32 = arith.constant 0 : i32
    %c0_i32_0 = arith.constant 0 : i32
    %c0_i32_1 = arith.constant 0 : i32
    return %c0_i32, %c0_i32_0 : i32, i32
  }
  func.func @transform_3(%arg0: i32) -> (i32, i32) {
    %c0_i32 = arith.constant 0 : i32
    %c0_i32_0 = arith.constant 0 : i32
    %c0_i32_1 = arith.constant 0 : i32
    return %c0_i32, %c0_i32_0 : i32, i32
  }
  func.func @transform_4(%arg0: i32) -> (i32, i32) {
    %c0_i32 = arith.constant 0 : i32
    %c0_i32_0 = arith.constant 0 : i32
    %c0_i32_1 = arith.constant 0 : i32
    return %c0_i32, %c0_i32_0 : i32, i32
  }
  func.func @transform_5(%arg0: i32) -> (i32, i32, i32) {
    %c0_i32 = arith.constant 0 : i32
    %c0_i32_0 = arith.constant 0 : i32
    %c0_i32_1 = arith.constant 0 : i32
    return %arg0, %c0_i32, %c0_i32_0 : i32, i32, i32
  }
}

</mosaic_0001>

<bundles_post_ra>
// kernel: model_forward.1
= control target key start
LH: loop header
LB: loop body
LE: loop exit
PB: predicated region body
PF: predicated region fallthrough
CT: control target
= control target key end

     0   :  { %10 = vsyncpa [#allocation3], 0  ;;  %s2292_s0 = inlined_call_operand.vmem [shape: bf16[2,288,12], index: 0, kind: input, shape index: {}]   ;;  %s2293_s1 = inlined_call_operand.vmem [shape: bf16[3,12,32], index: 1, kind: input, shape index: {}]   ;;  %s2294_s2 = inlined_call_operand.vmem [shape: f32[1,32], index: 2, kind: input, shape index: {}]   ;;  %s2295_s3 = inlined_call_operand.vmem [shape: f32[32,128], index: 3, kind: input, shape index: {}]   ;;  %s2296_s4 = inlined_call_operand.vmem [shape: f32[1,128], index: 4, kind: input, shape index: {}]   ;;  %s2297_s5 = inlined_call_operand.hbm [shape: f32[2,1,128], index: 5, kind: output, shape index: {}]  }
   0x1   :  { %12 = vsyncpa [#allocation3 + $0x1], 0  ;;  %s1874_s18 = smov 0   ;;  %s1876_s19 = smov 0  }
   0x2   :  { %s1878_s20 = smov 0   ;;  %s1880_s21 = smov 0  }
   0x3 LB: > { %s1895_s22 = sadd.s32 4294967295, %s1838_s21   ;;  %s1391_s23 = sadd.s32 4294967294, %s1838_s21   ;;  %s1838_s21 = sphi %s1880_s21, %s2353_s21   ;;  %s1834_s20 = sphi %s1878_s20, %s2352_s20   ;;  %s1830_s19 = sphi %s1876_s19, %s2351_s19   ;;  %s1826_s18 = sphi %s1874_s18, %s2350_s18  }
   0x4   : > { %s1899_s24 = sadd.s32 1, %s1838_s21   ;;  %s135_s25 = sadd.s32 1, %s1834_s20 }
   0x5   : > { %s132_s26 = ssub.s32 %s1838_s21, %s1899_s24  ;;  %p145_p0 = scmp.ne.s32.totalorder %s1834_s20, %s1830_s19 }
   0x6   : > { %p133_p1 = scmp.eq.s32.totalorder %s132_s26, 0  ;;  %p146_p2 = scmp.eq.s32.totalorder %s1895_s22, 1 }
   0x7   : > { %p151_p3 = scmp.ne.s32.totalorder %s1830_s19, %s1826_s18  ;;  %p152_p4 = scmp.eq.s32.totalorder %s1391_s23, 1 }
   0x8   : > { %s1910_s27 = scalar_select %p133_p1, %s1834_s20, %s135_s25  }
   0x9   : > { %p1912_p5 = por %p146_p2, %p145_p0  ;;  %p1916_p6 = por %p152_p4, %p151_p3 }
   0xa   : > { %p1394_p7 = scmp.ge.s32.totalorder %s1838_s21, 1  ;;  %p190_p8 = scmp.lt.s32.totalorder %s1838_s21, 3 }
   0xc   : > { %p191_p9 = pnand %p1394_p7, %p190_p8 }
   0xe   : > { %194 = sbr.rel (%p191_p9) target bundleno = 764 (0x2fc), region = 40 }
  0x13   : > { %v1742_v0 = vld [vmem:[%s2293_s1 + $0x8] sm:$0x3f]   ;;  %vm396_vm0 = vcmask 1045504   ;;  %p217_p10 = scmp.lt.s32.totalorder %s1895_s22, 1  ;;  %v1755_v2 = vld [vmem:[%s2293_s1] sm:$0x3f]  }
  0x14   : > { %1695 = vmatprep.subr.msk.bf16.mxu0 %vm396_vm0, %v1742_v0  ;;  %1696 = vmatprep.subr.msk.bf16.mxu1 %vm396_vm0, %v1742_v0  ;;  %v398_v1 = vsel %vm396_vm0, %v1742_v0, 0  ;;  %v1761_v3 = vld [vmem:[%s2293_s1 + $0x10] sm:$0x3f]   ;;  %vm347_vm1 = vcmask 97280   ;;  %v575_v9 = vsel %vm396_vm0, %v1755_v2, 0  ;;  %v2298_v51 = vmov 0.00390625  }
  0x15   : > { %1581 = vmatpush3.bf16.msra.mxu0 %v398_v1  ;;  %1694 = vmatpush3.bf16.msra.mxu1 %v398_v1  ;;  %s218_s9 = scalar_select %p217_p10, %s1895_s22, 1  ;;  %v907_v7 = vsel %vm396_vm0, %v1761_v3, 0  ;;  %vm1842_vm2 = vmmov 0   ;;  %vm1248_vm3 = vcmask 261120  }
  0x16   : > { %1697 = vmatprep.subr.msk.bf16.mxu1 %vm396_vm0, %v1755_v2  ;;  %1698 = vmatprep.subr.msk.bf16.mxu0 %vm396_vm0, %v1761_v3  ;;  %s215_s10 = sand.u32 1, %s1830_s19   ;;  %s1486_s13 = sshll.u32 %s1895_s22, 4 }
  0x17   : > { %s1699_s12 = smul.u32 144, %s218_s9  ;;  %s216_s14 = scalar_lea.vmem [#allocation2], %s215_s10 }
  0x18   : > { %s2257_s23 = scalar_lea.hbm %s2297_s5, %s1486_s13  ;;  %s1324_s25 = scalar_lea.sflag [#allocation3], %s215_s10 }
  0x19   : > { %s1941_s15 = scalar_lea.vmem %s2292_s0, %s1699_s12  ;;  %s1843_s30 = smov [#allocation2]  }
  0x1a   : > { %v1743_v4 = vld [vmem:[%s1941_s15 + $0x8] sm:$0xff]   ;;  %v1945_v5 = vld [vmem:[%s1941_s15 + $0x58] sm:$0xff]   ;;  %v1745_v6 = vld [vmem:[%s1941_s15 + $0x10] sm:$0xff]   ;;  %s1782_s22 = sshll.u32 %s1843_s30, 4  ;;  %s1783_s22 = int_to_ptr.vmem [resolvable:$false] %s1782_s22 }
  0x1b   : > { %1582 = vmatprep.mubr.msk.bf16.mxu0 %vm347_vm1, %v1743_v4  ;;  %1602 = vmatprep.mubr.msk.bf16.mxu1 %vm347_vm1, %v1945_v5  ;;  %v1746_v8 = vld [vmem:[%s1941_s15 + $0x60] sm:$0xff]   ;;  %v1747_v10 = vld [vmem:[%s1941_s15 + $0x18] sm:$0xff]   ;;  %v1748_v11 = vld [vmem:[%s1941_s15 + $0x68] sm:$0xff]   ;;  %s1784_s6 = scalar_lea.vmem %s1783_s22, 32 }
  0x1c   : > { %1583 = vmatmul.mubr.msk.bf16.vlgmr.msra.gmra.mxu0 %vm347_vm1, %v1745_v6  ;;  %1603 = vmatmul.mubr.msk.bf16.vlgmr.msra.gmra.mxu1 %vm347_vm1, %v1746_v8  ;;  %v1749_v12 = vld [vmem:[%s1941_s15 + $0x20] sm:$0xff]   ;;  %v1750_v13 = vld [vmem:[%s1941_s15 + $0x70] sm:$0xff]   ;;  %v1751_v14 = vld [vmem:[%s1941_s15 + $0x28] sm:$0xff]  }
  0x1d   : > { %1649 = vmatpush3.bf16.msra.mxu0 %v907_v7  ;;  %1586 = vmatprep.mubr.msk.bf16.mxu0 %vm347_vm1, %v1747_v10  ;;  %v1752_v15 = vld [vmem:[%s1941_s15 + $0x78] sm:$0xff]   ;;  %v1753_v16 = vld [vmem:[%s1941_s15 + $0x30] sm:$0xff]   ;;  %v1754_v17 = vld [vmem:[%s1941_s15 + $0x80] sm:$0xff]  }
  0x1e   : > { %1615 = vmatpush3.bf16.msra.mxu1 %v575_v9  ;;  %1606 = vmatprep.mubr.msk.bf16.mxu1 %vm347_vm1, %v1748_v11  ;;  %v1756_v18 = vld [vmem:[%s1941_s15 + $0x38] sm:$0xff]   ;;  %v1757_v19 = vld [vmem:[%s1941_s15] sm:$0xff]   ;;  %v1759_v21 = vld [vmem:[%s1941_s15 + $0x48] sm:$0xff]  }
  0x1f   : > { %v1758_v20 = vld [vmem:[%s1941_s15 + $0x40] sm:$0xff]   ;;  %v1760_v22 = vld [vmem:[%s1941_s15 + $0x50] sm:$0xff]   ;;  %v1763_v24 = vld [vmem:[%s1941_s15 + $0x18] sm:$0xff]  }
  0x20   : > { %v1762_v23 = vld [vmem:[%s1941_s15 + $0x10] sm:$0xff]   ;;  %v1764_v25 = vld [vmem:[%s1941_s15 + $0x20] sm:$0xff]   ;;  %v1765_v26 = vld [vmem:[%s1941_s15 + $0x28] sm:$0xff]  }
  0x21   : > { %v1766_v27 = vld [vmem:[%s1941_s15 + $0x30] sm:$0xff]   ;;  %v1767_v28 = vld [vmem:[%s1941_s15 + $0x38] sm:$0xff]   ;;  %v1768_v29 = vld [vmem:[%s1941_s15 + $0x40] sm:$0xff]  }
  0x22   : > { %v1769_v30 = vld [vmem:[%s1941_s15 + $0x48] sm:$0xff]   ;;  %v1770_v31 = vld [vmem:[%s1941_s15 + $0x50] sm:$0xff]   ;;  %v1771_v32 = vld [vmem:[%s1941_s15 + $0x58] sm:$0xff]  }
  0x23   : > { %v1772_v33 = vld [vmem:[%s1941_s15 + $0x60] sm:$0xff]   ;;  %v1773_v34 = vld [vmem:[%s1941_s15 + $0x68] sm:$0xff]   ;;  %v1774_v35 = vld [vmem:[%s1941_s15 + $0x70] sm:$0xff]  }
  0x24   : > { %1587 = vmatmul.mubr.msk.bf16.gmra.mxu0 %vm347_vm1, %v1749_v12  ;;  %1607 = vmatmul.mubr.msk.bf16.gmra.mxu1 %vm347_vm1, %v1750_v13  ;;  %v1775_v36 = vld [vmem:[%s1941_s15 + $0x78] sm:$0xff]   ;;  %v1776_v37 = vld [vmem:[%s1941_s15 + $0x80] sm:$0xff]   ;;  %v1777_v38 = vld [vmem:[%s1941_s15 + $0x88] sm:$0xff]   ;;  %s1336_s15 = sshll.u32 %s216_s14, 4  ;;  %s1337_s15 = int_to_ptr.vmem [resolvable:$true] %s1336_s15 }
  0x25   : > { %1590 = vmatprep.mubr.msk.bf16.mxu0 %vm347_vm1, %v1751_v14  ;;  %1610 = vmatprep.mubr.msk.bf16.mxu1 %vm347_vm1, %v1752_v15  ;;  %s1778_s26 = scalar_lea.vmem %s1337_s15, 16  ;;  %p1785_p0 = scmp.lt.s32.totalorder %s1337_s15, %s1783_s22 }
  0x26   : > { %p1779_p11 = scmp.ne.s32.totalorder %s1337_s15, %s1778_s26  ;;  %p1786_p1 = scmp.lt.s32.totalorder %s1784_s6, %s1778_s26 }
  0x28   : > { %p1780_p12 = pnand %p1779_p11, %p1912_p5  ;;  %p1787_p2 = por %p1786_p1, %p1785_p0 }
  0x2a   : > { %p1781_p13 = pneg %p1780_p12 }
  0x2c   : > { %1591 = vmatmul.mubr.msk.bf16.gmra.mxu0 %vm347_vm1, %v1753_v16  ;;  %1611 = vmatmul.mubr.msk.bf16.gmra.mxu1 %vm347_vm1, %v1754_v17  ;;  %p1788_p3 = pnand %p1787_p2, %p1781_p13 }
  0x2d   : > { %1594 = vmatprep.mubr.msk.bf16.mxu0 %vm347_vm1, %v1756_v18  ;;  %1616 = vmatprep.mubr.msk.bf16.mxu1 %vm347_vm1, %v1757_v19 }
  0x34   : > { %1595 = vmatmul.mubr.msk.bf16.gmra.mxu0 %vm347_vm1, %v1758_v20  ;;  %1617 = vmatmul.mubr.msk.bf16.vlgmr.msra.gmra.mxu1 %vm347_vm1, %v1743_v4 }
  0x35   : > { %1598 = vmatprep.mubr.msk.bf16.mxu0 %vm347_vm1, %v1759_v21  ;;  %1620 = vmatprep.mubr.msk.bf16.mxu1 %vm347_vm1, %v1745_v6 }
  0x3c   : > { %1599 = vmatmul.mubr.msk.bf16.gmra.mxu0 %vm347_vm1, %v1760_v22  ;;  %1621 = vmatmul.mubr.msk.bf16.gmra.mxu1 %vm347_vm1, %v1747_v10 }
  0x3d   : > { %1650 = vmatprep.mubr.msk.bf16.mxu0 %vm347_vm1, %v1762_v23  ;;  %1624 = vmatprep.mubr.msk.bf16.mxu1 %vm347_vm1, %v1749_v12 }
  0x44   : > { %1651 = vmatmul.mubr.msk.bf16.vlgmr.msra.gmra.mxu0 %vm347_vm1, %v1763_v24  ;;  %1625 = vmatmul.mubr.msk.bf16.gmra.mxu1 %vm347_vm1, %v1751_v14 }
  0x45   : > { %1654 = vmatprep.mubr.msk.bf16.mxu0 %vm347_vm1, %v1764_v25  ;;  %1628 = vmatprep.mubr.msk.bf16.mxu1 %vm347_vm1, %v1753_v16 }
  0x4c   : > { %1655 = vmatmul.mubr.msk.bf16.gmra.mxu0 %vm347_vm1, %v1765_v26  ;;  %1629 = vmatmul.mubr.msk.bf16.gmra.mxu1 %vm347_vm1, %v1756_v18 }
  0x4d   : > { %1658 = vmatprep.mubr.msk.bf16.mxu0 %vm347_vm1, %v1766_v27  ;;  %1632 = vmatprep.mubr.msk.bf16.mxu1 %vm347_vm1, %v1758_v20 }
  0x54   : > { %1659 = vmatmul.mubr.msk.bf16.gmra.mxu0 %vm347_vm1, %v1767_v28  ;;  %1633 = vmatmul.mubr.msk.bf16.gmra.mxu1 %vm347_vm1, %v1759_v21 }
  0x55   : > { %1662 = vmatprep.mubr.msk.bf16.mxu0 %vm347_vm1, %v1768_v29  ;;  %1636 = vmatprep.mubr.msk.bf16.mxu1 %vm347_vm1, %v1760_v22 }
  0x5c   : > { %1663 = vmatmul.mubr.msk.bf16.gmra.mxu0 %vm347_vm1, %v1769_v30  ;;  %1637 = vmatmul.mubr.msk.bf16.gmra.mxu1 %vm347_vm1, %v1945_v5 }
  0x5d   : > { %1666 = vmatprep.mubr.msk.bf16.mxu0 %vm347_vm1, %v1770_v31  ;;  %1640 = vmatprep.mubr.msk.bf16.mxu1 %vm347_vm1, %v1746_v8 }
  0x64   : > { %1667 = vmatmul.mubr.msk.bf16.gmra.mxu0 %vm347_vm1, %v1771_v32  ;;  %1641 = vmatmul.mubr.msk.bf16.gmra.mxu1 %vm347_vm1, %v1748_v11 }
  0x65   : > { %1670 = vmatprep.mubr.msk.bf16.mxu0 %vm347_vm1, %v1772_v33  ;;  %1644 = vmatprep.mubr.msk.bf16.mxu1 %vm347_vm1, %v1750_v13 }
  0x6c   : > { %1671 = vmatmul.mubr.msk.bf16.gmra.mxu0 %vm347_vm1, %v1773_v34  ;;  %1645 = vmatmul.mubr.msk.bf16.gmra.mxu1 %vm347_vm1, %v1752_v15 }
  0x6d   : > { %1674 = vmatprep.mubr.msk.bf16.mxu0 %vm347_vm1, %v1774_v35  ;;  %1237 = vmatprep.mubr.f32.mxu1 %v2298_v51 }
  0x74   : > { %1675 = vmatmul.mubr.msk.bf16.gmra.mxu0 %vm347_vm1, %v1775_v36 }
  0x75   : > { %1678 = vmatprep.mubr.msk.bf16.mxu0 %vm347_vm1, %v1776_v37 }
  0x7c   : > { %1679 = vmatmul.mubr.msk.bf16.gmra.mxu0 %vm347_vm1, %v1777_v38 }
  0xdc   : > { %v1584_v39 = vpop.f32.mrf.mxu0  ;;  %v2030_v40 = vpop.f32.mrf.mxu1 }
  0xde   : > { %v434_v41 = vpop.f32.mrf.mxu0  ;;  %v2032_v42 = vpop.f32.mrf.mxu1 }
  0xdf   : > { %2301 = vst [vmem:[#allocation5_spill] sm:$0xff] %v2032_v42  ;;  %v2151_v42 = vld [vmem:[%s2294_s2] ss:$0 sm:$0xff] }
  0xe0   : > { %v1585_v43 = vpop.f32.mrf.mxu0  ;;  %v2034_v44 = vpop.f32.mrf.mxu1 }
  0xe2   : > { %v437_v45 = vpop.f32.mrf.mxu0  ;;  %v2036_v46 = vpop.f32.mrf.mxu1 }
  0xe4   : > { %v1588_v47 = vpop.f32.mrf.mxu0  ;;  %v2038_v48 = vpop.f32.mrf.mxu1 }
  0xe6   : > { %v450_v49 = vpop.f32.mrf.mxu0  ;;  %v2040_v50 = vpop.f32.mrf.mxu1 }
  0xe8   : > { %v1589_v52 = vpop.f32.mrf.mxu0  ;;  %v2043_v53 = vpop.f32.mrf.mxu1 }
  0xea   : > { %v453_v54 = vpop.f32.mrf.mxu0  ;;  %v2045_v55 = vpop.f32.mrf.mxu1 }
  0xec   : > { %v2047_v56 = vpop.f32.mrf.mxu0  ;;  %v2049_v57 = vpop.f32.mrf.mxu1 }
  0xee   : > { %v2051_v58 = vpop.f32.mrf.mxu0  ;;  %v2053_v59 = vpop.f32.mrf.mxu1 }
  0xf0   : > { %v2055_v60 = vpop.f32.mrf.mxu0  ;;  %v2057_v61 = vpop.f32.mrf.mxu1 }
  0xf2   : > { %v2059_v62 = vpop.f32.mrf.mxu0  ;;  %v2061_v63 = vpop.f32.mrf.mxu1 }
  0xf4   : > { %v2063_v0 = vpop.f32.mrf.mxu0  ;;  %v1618_v1 = vpop.f32.mrf.mxu1 }
  0xf5   : > { %v620_v2 = vadd.f32 %v1618_v1, %v1584_v39 }
  0xf6   : > { %v2065_v3 = vpop.f32.mrf.mxu0  ;;  %v611_v4 = vpop.f32.mrf.mxu1 }
  0xf7   : > { %v612_v5 = vadd.f32 %v611_v4, %v434_v41 }
  0xf8   : > { %v2067_v6 = vpop.f32.mrf.mxu0  ;;  %v1619_v7 = vpop.f32.mrf.mxu1 }
  0xf9   : > { %v623_v8 = vadd.f32 %v1619_v7, %v1585_v43 }
  0xfa   : > { %v2069_v9 = vpop.f32.mrf.mxu0  ;;  %v614_v10 = vpop.f32.mrf.mxu1 }
  0xfb   : > { %v615_v11 = vadd.f32 %v614_v10, %v437_v45 }
  0xfc   : > { %v2071_v12 = vpop.f32.mrf.mxu0  ;;  %v1622_v13 = vpop.f32.mrf.mxu1 }
  0xfd   : > { %2302 = vst [vmem:[#allocation6_spill] sm:$0xff] %v2071_v12  ;;  %v636_v14 = vadd.f32 %v1622_v13, %v1588_v47 }
  0xfe   : > { %v2073_v15 = vpop.f32.mrf.mxu0  ;;  %v627_v16 = vpop.f32.mrf.mxu1 }
  0xff   : > { %2303 = vst [vmem:[#allocation7_spill] sm:$0xff] %v2073_v15  ;;  %v628_v17 = vadd.f32 %v627_v16, %v450_v49 }
 0x100   : > { %v2075_v18 = vpop.f32.mrf.mxu0  ;;  %v1623_v19 = vpop.f32.mrf.mxu1 }
 0x101   : > { %2304 = vst [vmem:[#allocation8_spill] sm:$0xff] %v2075_v18  ;;  %v639_v20 = vadd.f32 %v1623_v19, %v1589_v52 }
 0x102   : > { %v2077_v21 = vpop.f32.mrf.mxu0  ;;  %v630_v22 = vpop.f32.mrf.mxu1 }
 0x103   : > { %2305 = vst [vmem:[#allocation9_spill] sm:$0xff] %v2077_v21  ;;  %v631_v23 = vadd.f32 %v630_v22, %v453_v54 }
 0x104   : > { %v1652_v24 = vpop.f32.mrf.mxu0  ;;  %v2079_v25 = vpop.f32.mrf.mxu1 }
 0x105   : > { %v2081_v26 = vadd.f32 %v1652_v24, %v620_v2 }
 0x106   : > { %v943_v27 = vpop.f32.mrf.mxu0  ;;  %v2083_v28 = vpop.f32.mrf.mxu1 }
 0x107   : > { %2306 = vst [vmem:[#allocation10_spill] sm:$0xff] %v2081_v26  ;;  %v2085_v29 = vadd.f32 %v943_v27, %v612_v5 }
 0x108   : > { %v1653_v30 = vpop.f32.mrf.mxu0  ;;  %v2087_v31 = vpop.f32.mrf.mxu1 }
 0x109   : > { %2307 = vst [vmem:[#allocation11_spill] sm:$0xff] %v2085_v29  ;;  %v2089_v32 = vadd.f32 %v1653_v30, %v623_v8 }
 0x10a   : > { %v946_v33 = vpop.f32.mrf.mxu0  ;;  %v2091_v34 = vpop.f32.mrf.mxu1 }
 0x10b   : > { %2308 = vst [vmem:[#allocation12_spill] sm:$0xff] %v2089_v32  ;;  %v2093_v35 = vadd.f32 %v946_v33, %v615_v11 }
 0x10c   : > { %v1656_v36 = vpop.f32.mrf.mxu0  ;;  %v1630_v37 = vpop.f32.mrf.mxu1 }
 0x10d   : > { %2309 = vst [vmem:[#allocation13_spill] sm:$0xff] %v2093_v35  ;;  %v2095_v38 = vadd.f32 %v1656_v36, %v636_v14 }
 0x10e   : > { %v959_v39 = vpop.f32.mrf.mxu0  ;;  %v659_v41 = vpop.f32.mrf.mxu1 }
 0x10f   : > { %2310 = vst [vmem:[#allocation14_spill] sm:$0xff] %v2095_v38  ;;  %v2097_v43 = vadd.f32 %v959_v39, %v628_v17 }
 0x110   : > { %v1657_v45 = vpop.f32.mrf.mxu0  ;;  %v1631_v47 = vpop.f32.mrf.mxu1 }
 0x111   : > { %2311 = vst [vmem:[#allocation15_spill] sm:$0xff] %v2097_v43  ;;  %v2099_v49 = vadd.f32 %v1657_v45, %v639_v20 }
 0x112   : > { %v962_v52 = vpop.f32.mrf.mxu0  ;;  %v662_v54 = vpop.f32.mrf.mxu1 }
 0x113   : > { %2312 = vst [vmem:[#allocation16_spill] sm:$0xff] %v2099_v49  ;;  %v2101_v1 = vadd.f32 %v962_v52, %v631_v23  ;;  %v663_v49 = vadd.f32 %v662_v54, %v2069_v9 }
 0x114   : > { %v2103_v2 = vpop.f32.mrf.mxu0  ;;  %v2105_v4 = vpop.f32.mrf.mxu1 }
 0x115   : > { %2313 = vst [vmem:[#allocation17_spill] sm:$0xff] %v2101_v1  ;;  %2314 = vst [vmem:[#allocation18_spill] sm:$0xff] %v2105_v4  ;;  %v671_v1 = vadd.f32 %v1631_v47, %v2067_v6  ;;  %v668_v4 = vadd.f32 %v1630_v37, %v2063_v0 }
 0x116   : > { %v2107_v5 = vpop.f32.mrf.mxu0  ;;  %v2109_v7 = vpop.f32.mrf.mxu1 }
 0x117   : > { %2315 = vst [vmem:[#allocation19_spill] sm:$0xff] %v2109_v7 }
 0x118   : > { %v2111_v8 = vpop.f32.mrf.mxu0  ;;  %v2113_v10 = vpop.f32.mrf.mxu1 }
 0x119   : > { %2316 = vst [vmem:[#allocation20_spill] sm:$0xff] %v2113_v10 }
 0x11a   : > { %v2115_v11 = vpop.f32.mrf.mxu0  ;;  %v2117_v13 = vpop.f32.mrf.mxu1 }
 0x11b   : > { %2317 = vst [vmem:[#allocation21_spill] sm:$0xff] %v2117_v13 }
 0x11c   : > { %v1664_v14 = vpop.f32.mrf.mxu0  ;;  %v2119_v16 = vpop.f32.mrf.mxu1 }
 0x11e   : > { %v991_v17 = vpop.f32.mrf.mxu0  ;;  %v2121_v19 = vpop.f32.mrf.mxu1 }
 0x11f   : > { %2318 = vst [vmem:[#allocation22_spill] sm:$0xff] %v2121_v19 }
 0x120   : > { %v1665_v20 = vpop.f32.mrf.mxu0  ;;  %v2123_v22 = vpop.f32.mrf.mxu1 }
 0x121   : > { %v1085_v12 = vadd.f32 %v1665_v20, %v671_v1 }
 0x122   : > { %v994_v23 = vpop.f32.mrf.mxu0  ;;  %v2125_v24 = vpop.f32.mrf.mxu1 }
 0x123   : > { %v1124_v37 = vadd.f32 %v2151_v42, %v1085_v12 }
 0x124   : > { %v2127_v27 = vpop.f32.mrf.mxu0  ;;  %v1642_v30 = vpop.f32.mrf.mxu1 }
 0x125   : > { %2319 = vst [vmem:[#allocation23_spill] sm:$0xff] %v2127_v27 }
 0x126   : > { %v2129_v33 = vpop.f32.mrf.mxu0  ;;  %v707_v36 = vpop.f32.mrf.mxu1 }
 0x127   : > { %2320 = vst [vmem:[#allocation24_spill] sm:$0xff] %v2129_v33 }
 0x128   : > { %v2131_v39 = vpop.f32.mrf.mxu0  ;;  %v1643_v45 = vpop.f32.mrf.mxu1 }
 0x129   : > { %2321 = vst [vmem:[#allocation25_spill] sm:$0xff] %v2131_v39  ;;  %v719_v47 = vadd.f32 %v1643_v45, %v2043_v53  ;;  %v652_v53 = vadd.f32 %v2079_v25, %v2047_v56  ;;  %v708_v25 = vadd.f32 %v707_v36, %v2040_v50 }
 0x12a   : > { %v2133_v52 = vpop.f32.mrf.mxu0  ;;  %v710_v29 = vpop.f32.mrf.mxu1 }
 0x12b   : > { %2322 = vst [vmem:[#allocation26_spill] sm:$0xff] %v2133_v52 }
 0x12c   : > { %v2135_v51 = vpop.f32.mrf.mxu0  ;;  %v1646_v32 = vpop.f32.mrf.mxu1 }
 0x12d   : > { %v732_v52 = vadd.f32 %v1646_v32, %v2049_v57  ;;  %v660_v32 = vadd.f32 %v659_v41, %v2065_v3  ;;  %v716_v3 = vadd.f32 %v1642_v30, %v2038_v48  ;;  %v647_v48 = vadd.f32 %v2091_v34, %v2059_v62 }
 0x12e   : > { %v2137_v35 = vpop.f32.mrf.mxu0  ;;  %v723_v43 = vpop.f32.mrf.mxu1 }
 0x12f   : > { %2323 = vst [vmem:[#allocation27_spill] sm:$0xff] %v2137_v35  ;;  %v724_v6 = vadd.f32 %v723_v43, %v2053_v59  ;;  %v655_v59 = vadd.f32 %v2087_v31, %v2055_v60  ;;  %v1079_v62 = vadd.f32 %v2115_v11, %v647_v48 }
 0x130   : > { %v2139_v26 = vpop.f32.mrf.mxu0  ;;  %v1647_v13 = vpop.f32.mrf.mxu1 }
 0x131   : > { %v735_v10 = vadd.f32 %v1647_v13, %v2057_v61  ;;  %v1083_v61 = vadd.f32 %v994_v23, %v663_v49 }
 0x132   : > { %v2141_v7 = vpop.f32.mrf.mxu0  ;;  %v726_v38 = vpop.f32.mrf.mxu1 }
 0x133   : > { %2324 = vst [vmem:[#allocation28_spill] sm:$0xff] %v2141_v7  ;;  %v1084_v7 = vadd.f32 %v1664_v14, %v668_v4  ;;  %v727_v57 = vadd.f32 %v726_v38, %v2061_v63  ;;  %v1082_v38 = vadd.f32 %v991_v17, %v660_v32  ;;  %v1122_v49 = vadd.f32 %v2151_v42, %v1083_v61  ;;  %v2329_v61 = vld [vmem:[#allocation8_spill] sm:$0xff] }
 0x134   : > { %v1676_v15 = vpop.f32.mrf.mxu0  ;;  %v1080_v14 = vadd.f32 %v2103_v2, %v652_v53  ;;  %v703_v2 = vadd.f32 %v2123_v22, %v2034_v44  ;;  %v1118_v22 = vadd.f32 %v2151_v42, %v1079_v62 }
 0x135   : > { %v1123_v63 = vadd.f32 %v2151_v42, %v1084_v7  ;;  %v1096_v60 = vadd.f32 %v1676_v15, %v716_v3  ;;  %v1121_v56 = vadd.f32 %v2151_v42, %v1082_v38  ;;  %v644_v15 = vadd.f32 %v2083_v28, %v2051_v58  ;;  %v2333_v3 = vld [vmem:[#allocation6_spill] sm:$0xff] }
 0x136   : > { %v1039_v27 = vpop.f32.mrf.mxu0  ;;  %v1154_v34 = vmax.f32 %v1122_v49, 0.0  ;;  %v700_v58 = vadd.f32 %v2119_v16, %v2030_v40  ;;  %v1093_v28 = vadd.f32 %v2139_v26, %v703_v2  ;;  %v2325_v16 = vld [vmem:[#allocation5_spill] sm:$0xff]  ;;  %v2343_v2 = vld [vmem:[#allocation26_spill] sm:$0xff] }
 0x137   : > { %v1155_v17 = vmax.f32 %v1123_v63, 0.0  ;;  %v1135_v20 = vadd.f32 %v2151_v42, %v1096_v60  ;;  %v1094_v50 = vadd.f32 %v1039_v27, %v708_v25  ;;  %v1078_v30 = vadd.f32 %v2107_v5, %v644_v15  ;;  %v2341_v15 = vld [vmem:[#allocation7_spill] sm:$0xff] }
 0x138   : > { %v1677_v33 = vpop.f32.mrf.mxu0  ;;  %v695_v27 = vadd.f32 %v2125_v24, %v2036_v46  ;;  %v1092_v5 = vadd.f32 %v2135_v51, %v700_v58  ;;  %v2328_v46 = vld [vmem:[#allocation16_spill] sm:$0xff]  ;;  %v1150_v24 = vmax.f32 %v1118_v22, 0.0 }
 0x139   : > { %v1097_v41 = vadd.f32 %v1677_v33, %v719_v47  ;;  %v1153_v33 = vmax.f32 %v1121_v56, 0.0  ;;  %v1133_v45 = vadd.f32 %v2151_v42, %v1094_v50  ;;  %v1117_v26 = vadd.f32 %v2151_v42, %v1078_v30  ;;  %v2330_v47 = vld [vmem:[#allocation20_spill] sm:$0xff] }
 0x13a   : > { %v1042_v21 = vpop.f32.mrf.mxu0  ;;  %v1116_v51 = vadd.f32 %v2151_v42, %v2328_v46  ;;  %v2345_v58 = vld [vmem:[#allocation24_spill] sm:$0xff] }
 0x13b   : > { %v1149_v38 = vmax.f32 %v1117_v26, 0.0 }
 0x13c   : > { %v1680_v39 = vpop.f32.mrf.mxu0  ;;  %v1148_v49 = vmax.f32 %v1116_v51, 0.0  ;;  %v1246_v51 = vld [vmem:[%s2295_s3 + $0x18] sm:$0xff] }
 0x13d   : > { %v1100_v18 = vadd.f32 %v1680_v39, %v732_v52  ;;  %v1167_v39 = vmax.f32 %v1135_v20, 0.0  ;;  %v2326_v52 = vld [vmem:[#allocation22_spill] sm:$0xff] }
 0x13e   : > { %v1055_v35 = vpop.f32.mrf.mxu0 }
 0x13f   : > { %v1139_v54 = vadd.f32 %v2151_v42, %v1100_v18  ;;  %v1098_v1 = vadd.f32 %v1055_v35, %v724_v6  ;;  %v1081_v18 = vadd.f32 %v2111_v8, %v655_v59  ;;  %v1156_v35 = vmax.f32 %v1124_v37, 0.0  ;;  %v2332_v59 = vld [vmem:[#allocation14_spill] sm:$0xff] }
 0x140   : > { %v1681_v19 = vpop.f32.mrf.mxu0  ;;  %v1136_v8 = vadd.f32 %v2151_v42, %v1097_v41  ;;  %v692_v6 = vadd.f32 %v2326_v52, %v2325_v16  ;;  %v1115_v63 = vadd.f32 %v2151_v42, %v2332_v59  ;;  %v2334_v41 = vld [vmem:[#allocation18_spill] sm:$0xff] }
 0x141   : > { %v1101_v0 = vadd.f32 %v1681_v19, %v735_v10  ;;  %v711_v10 = vadd.f32 %v710_v29, %v2045_v55  ;;  %v1171_v31 = vmax.f32 %v1139_v54, 0.0  ;;  %v1137_v7 = vadd.f32 %v2151_v42, %v1098_v1  ;;  %v2331_v1 = vld [vmem:[#allocation27_spill] sm:$0xff] }
 0x142   : > { %v1058_v9 = vpop.f32.mrf.mxu0  ;;  %v1120_v29 = vadd.f32 %v2151_v42, %v1081_v18  ;;  %v1168_v11 = vmax.f32 %v1136_v8, 0.0  ;;  %v1131_v54 = vadd.f32 %v2151_v42, %v1092_v5  ;;  %v1147_v8 = vmax.f32 %v1115_v63, 0.0 }
 0x143   : > { %v1140_v4 = vadd.f32 %v2151_v42, %v1101_v0  ;;  %v1099_v13 = vadd.f32 %v1058_v9, %v727_v57  ;;  %v1095_v19 = vadd.f32 %v1042_v21, %v711_v10  ;;  %v1169_v23 = vmax.f32 %v1137_v7, 0.0  ;;  %v2327_v0 = vld [vmem:[#allocation28_spill] sm:$0xff]  ;;  %v2336_v10 = vld [vmem:[#allocation17_spill] sm:$0xff] }
 0x144   : > { %v1119_v21 = vadd.f32 %v2151_v42, %v1080_v14  ;;  %v1152_v44 = vmax.f32 %v1120_v29, 0.0  ;;  %v1132_v57 = vadd.f32 %v2151_v42, %v1093_v28  ;;  %v1091_v32 = vadd.f32 %v2327_v0, %v695_v27  ;;  %v2338_v7 = vld [vmem:[#allocation21_spill] sm:$0xff]  ;;  %v2339_v14 = vld [vmem:[#allocation23_spill] sm:$0xff] }
 0x145   : > { %v1172_v12 = vmax.f32 %v1140_v4, 0.0  ;;  %v1138_v43 = vadd.f32 %v2151_v42, %v1099_v13  ;;  %v1134_v36 = vadd.f32 %v2151_v42, %v1095_v19  ;;  %v687_v9 = vadd.f32 %v2330_v47, %v2329_v61  ;;  %v2340_v19 = vld [vmem:[#allocation15_spill] sm:$0xff]  ;;  %v1244_v47 = vld [vmem:[%s2295_s3 + $0x8] sm:$0xff] }
 0x146   : > { %v1151_v40 = vmax.f32 %v1119_v21, 0.0  ;;  %v1090_v4 = vadd.f32 %v2331_v1, %v692_v6  ;;  %v1165_v13 = vmax.f32 %v1133_v45, 0.0  ;;  %v1164_v18 = vmax.f32 %v1132_v57, 0.0  ;;  %v2342_v29 = vld [vmem:[#allocation19_spill] sm:$0xff]  ;;  %v2347_v45 = vld [vmem:[#allocation13_spill] sm:$0xff] }
 0x147   : > { %1540 = vmatprep.subr.mxu1 %v1172_v12  ;;  %v1170_v55 = vmax.f32 %v1138_v43, 0.0  ;;  %v1166_v37 = vmax.f32 %v1134_v36, 0.0  ;;  %v684_v12 = vadd.f32 %v2334_v41, %v2333_v3  ;;  %v2335_v43 = vld [vmem:[#allocation25_spill] sm:$0xff]  ;;  %v1114_v60 = vadd.f32 %v2151_v42, %v2336_v10  ;;  %v2346_v36 = vld [vmem:[#allocation10_spill] sm:$0xff]  ;;  %v2348_v6 = vld [vmem:[#allocation11_spill] sm:$0xff] }
 0x148   : > { %1541 = vmatpush3.msra.mxu1 %v1156_v35  ;;  %v1089_v53 = vadd.f32 %v2335_v43, %v687_v9  ;;  %v1130_v35 = vadd.f32 %v2151_v42, %v1091_v32  ;;  %v1163_v56 = vmax.f32 %v1131_v54, 0.0  ;;  %v1129_v25 = vadd.f32 %v2151_v42, %v1090_v4  ;;  %v1243_v9 = vld [vmem:[%s2295_s3] sm:$0xff] }
 0x149   : > { %1542 = vmatprep.subr.mxu1 %v1171_v31  ;;  %v2337_v31 = vld [vmem:[#allocation9_spill] sm:$0xff]  ;;  %v676_v62 = vadd.f32 %v2342_v29, %v2341_v15  ;;  %v1146_v30 = vmax.f32 %v1114_v60, 0.0  ;;  %v1109_v57 = vadd.f32 %v2151_v42, %v2348_v6  ;;  %v1841_v61 = vmov 0.0  }
 0x14a   : > { %1543 = vmatpush3.msra.mxu1 %v1155_v17  ;;  %v679_v48 = vadd.f32 %v2338_v7, %v2337_v31  ;;  %v1088_v17 = vadd.f32 %v2339_v14, %v684_v12  ;;  %v1162_v50 = vmax.f32 %v1130_v35, 0.0 }
 0x14b   : > { %1544 = vmatprep.subr.mxu1 %v1170_v55  ;;  %v1113_v55 = vadd.f32 %v2151_v42, %v2340_v19  ;;  %v1086_v28 = vadd.f32 %v2345_v58, %v676_v62  ;;  %v1141_v46 = vmax.f32 %v1109_v57, 0.0 }
 0x14c   : > { %1545 = vmatpush3.msra.mxu1 %v1154_v34  ;;  %v1128_v34 = vadd.f32 %v2151_v42, %v1089_v53  ;;  %v1087_v20 = vadd.f32 %v2343_v2, %v679_v48 }
 0x14d   : > { %1546 = vmatprep.subr.mxu1 %v1169_v23  ;;  %v2344_v23 = vld [vmem:[#allocation12_spill] sm:$0xff]  ;;  %v1145_v22 = vmax.f32 %v1113_v55, 0.0  ;;  %v1125_v16 = vadd.f32 %v2151_v42, %v1086_v28 }
 0x14e   : > { %1547 = vmatpush3.msra.mxu1 %v1153_v33  ;;  %v1112_v21 = vadd.f32 %v2151_v42, %v2344_v23  ;;  %v1127_v33 = vadd.f32 %v2151_v42, %v1088_v17  ;;  %v1160_v27 = vmax.f32 %v1128_v34, 0.0  ;;  %v1126_v5 = vadd.f32 %v2151_v42, %v1087_v20 }
 0x14f   : > { %1548 = vmatprep.subr.mxu1 %v1168_v11  ;;  %v1161_v11 = vmax.f32 %v1129_v25, 0.0 }
 0x150   : > { %1549 = vmatpush3.msra.mxu1 %v1152_v44  ;;  %v1111_v44 = vadd.f32 %v2151_v42, %v2346_v36  ;;  %v1159_v26 = vmax.f32 %v1127_v33, 0.0  ;;  %v1158_v0 = vmax.f32 %v1126_v5, 0.0 }
 0x151   : > { %1550 = vmatprep.subr.mxu1 %v1167_v39  ;;  %v1144_v39 = vmax.f32 %v1112_v21, 0.0 }
 0x152   : > { %1551 = vmatpush3.msra.mxu1 %v1151_v40  ;;  %v1110_v40 = vadd.f32 %v2151_v42, %v2347_v45  ;;  %v1143_v52 = vmax.f32 %v1111_v44, 0.0  ;;  %v1245_v42 = vld [vmem:[%s2295_s3 + $0x10] sm:$0xff] }
 0x153   : > { %1552 = vmatprep.subr.mxu1 %v1166_v37  ;;  %v1157_v37 = vmax.f32 %v1125_v16, 0.0 }
 0x154   : > { %1553 = vmatpush3.msra.mxu1 %v1150_v24  ;;  %v1142_v32 = vmax.f32 %v1110_v40, 0.0  ;;  %v2349_v24 = vmov 0.00390625  }
 0x155   : > { %1554 = vmatprep.subr.mxu1 %v1165_v13  ;;  %v1247_v13 = vld [vmem:[%s2296_s4] sm:$0x1] }
 0x156   : > { %1555 = vmatpush3.msra.mxu1 %v1149_v38 }
 0x157   : > { %1556 = vmatprep.subr.mxu1 %v1164_v18 }
 0x158   : > { %1557 = vmatpush3.msra.mxu1 %v1148_v49 }
 0x159   : > { %1558 = vmatprep.subr.mxu1 %v1163_v56 }
 0x15a   : > { %1559 = vmatpush3.msra.mxu1 %v1147_v8 }
 0x15b   : > { %1560 = vmatprep.subr.mxu1 %v1162_v50 }
 0x15c   : > { %1561 = vmatpush3.msra.mxu1 %v1146_v30 }
 0x15d   : > { %1562 = vmatprep.subr.mxu1 %v1161_v11 }
 0x15e   : > { %1563 = vmatpush3.msra.mxu1 %v1145_v22 }
 0x15f   : > { %1564 = vmatprep.subr.mxu1 %v1160_v27 }
 0x160   : > { %1565 = vmatpush3.msra.mxu1 %v1144_v39 }
 0x161   : > { %1566 = vmatprep.subr.mxu1 %v1159_v26 }
 0x162   : > { %1567 = vmatpush3.msra.mxu1 %v1143_v52 }
 0x163   : > { %1568 = vmatprep.subr.mxu1 %v1158_v0 }
 0x164   : > { %1569 = vmatpush3.msra.mxu1 %v1142_v32 }
 0x165   : > { %1570 = vmatprep.subr.mxu1 %v1157_v37 }
 0x166   : > { %1571 = vmatpush3.msra.mxu1 %v1141_v46 }
 0x167   : > { %1238 = vmatmul.mubr.f32.vlgmr.msra.gmra.mxu1 %v2349_v24  ;;  %1682 = vmatprep.subr.mxu1 %v1841_v61 }
 0x168   : > { %1683 = vmatpush3.msra.mxu1 %v1246_v51  ;;  %1690 = vmatprep.mubr.msk.f32.mxu1 %vm1842_vm2, %v1841_v61 }
 0x169   : > { %1684 = vmatprep.subr.mxu1 %v1841_v61 }
 0x16a   : > { %1685 = vmatpush3.msra.mxu1 %v1245_v42 }
 0x16b   : > { %1686 = vmatprep.subr.mxu1 %v1841_v61 }
 0x16c   : > { %1687 = vmatpush3.msra.mxu1 %v1244_v47 }
 0x16d   : > { %1688 = vmatprep.subr.mxu1 %v1841_v61 }
 0x16e   : > { %1689 = vmatpush3.msra.mxu1 %v1243_v9 }
 0x227   : > { %v1572_v54 = vpop.f32.mrf.mxu1 }
 0x229   : > { %v1573_v1 = vpop.f32.mrf.mxu1 }
 0x22a   : > { %v1574_v4 = vadd.f32 %v1573_v1, %v1572_v54 }
 0x22c   : > { %1691 = vmatmul.mubr.msk.f32.vlgmr.msra.gmra.mxu1 %vm1248_vm3, %v1574_v4 }
 0x2ec   : > { %v1318_v59 = vpop.f32.mrf.mxu1 }
 0x2ed   : > { %v1319_v63 = vadd.f32 %v1318_v59, %v1247_v13 }
 0x2ee   : > { %v1692_v38 = vpop.f32.mrf.mxu1 }
 0x2ef   : > { %1322 = vst [vmem:[%s216_s14] sm:$0x1] %v1319_v63 }
 0x2f0   : > { %1791 = shalt.err (!%p1788_p3)
}
 0x2f1   : > { %s1792_s7 = scalar_lea.hbm %s2257_s23, 16  ;;  %s1796_s10 = scalar_lea.hbm %s2297_s5, 32 }
 0x2f2   : > { %p1793_p4 = scmp.ne.s32.totalorder %s2257_s23, %s1792_s7  ;;  %p1797_p9 = scmp.lt.s32.totalorder %s2257_s23, %s2297_s5 }
 0x2f3   : > { %p1798_p10 = scmp.lt.s32.totalorder %s1796_s10, %s1792_s7 }
 0x2f4   : > { %p1794_p7 = pnand %p1793_p4, %p1912_p5 }
 0x2f5   : > { %p1799_p11 = por %p1798_p10, %p1797_p9 }
 0x2f6   : > { %p1795_p8 = pneg %p1794_p7 }
 0x2f8   : > { %p1800_p12 = pnand %p1799_p11, %p1795_p8 }
 0x2fa   : > { %1803 = shalt.err (!%p1800_p12)
}
 0x2fb   : > { %1700 = dma.vmem_to_hbm [thread:$0]  (%p1912_p5), %s1337_s15, 16, %s2257_s23, %s1324_s25  }
 0x2fc PF: > { %p1706_p13 = scmp.ge.s32.totalorder %s1838_s21, 2  ;;  %s1348_s13 = sand.u32 1, %s1826_s18  }
 0x2fd   : > { %s1349_s14 = scalar_lea.sflag [#allocation3], %s1348_s13 }
 0x2fe   : > { %p1703_p0 = pnand %p1706_p13, %p1916_p6 }
 0x300   : > { %p1704_p1 = pneg %p1703_p0 }
 0x302   : > { %1821 = dma.done.wait (%p1704_p1), %s1349_s14, 16  }
 0x303   : > { %1823 = vsyncadd (%p1704_p1), %s1349_s14, 4294967280  ;;  %p15_p2 = scmp.ge.s32.totalorder %s1899_s24, 4   ;;  %s2350_s18 = smov %s1830_s19 }
 0x304   : > { %s2351_s19 = smov %s1834_s20  ;;  %s2352_s20 = smov %s1910_s27 }
 0x305   : > { %s2353_s21 = smov %s1899_s24  ;;  %17 = sbr.rel (!%p15_p2) target bundleno = 3 (0x3), region = 77 }
 0x30a   :  { %1353 = vsyncpa [#allocation3], 1 }
 0x30b   :  { %1355 = vsyncpa [#allocation3 + $0x1], 1 }

</bundles_post_ra>
